<compile_context>
chip_gen: v7x
topology: tpu7x:2x2x1
jax: 0.10.0
libtpu: 0.0.40
codegen_flags: <defaults>
</compile_context>

<pallas_src>
import functools

import jax
import jax.numpy as jnp
from jax import lax
from jax.experimental import pallas as pl
from jax.experimental.pallas import tpu as pltpu


def _round_up(a, m):
    return ((a + m - 1) // m) * m


def _patch_linear_kernel(x_ref, w_ref, b_ref, o_ref, *, c, p1, compute_dtype):
    """out[w, N] = bias + sum_{ci, pi} x[ci, pi] @ W[ci, pi] for one (batch, patch-row).

    x_ref: (1, c, 1, p1, w, p2)  input dtype (streamed, double-buffered)
    w_ref: (c, p1, p2, N)        compute dtype (VMEM resident, constant index map)
    b_ref: (1, N)                float32      (VMEM resident)
    o_ref: (1, 1, w, N)          output dtype
    """
    n_w = x_ref.shape[4]            # patches along image width
    n_out = w_ref.shape[3]          # model_dim
    acc = jnp.zeros((n_w, n_out), jnp.float32)
    if c * p1 <= 256:
        # Fully unrolled, static addressing (module default: c * p1 = 3 * 32 = 96).
        for ci in range(c):
            for pi in range(p1):
                xk = x_ref[0, ci, 0, pi].astype(compute_dtype)        # (w, p2)
                acc = acc + jnp.dot(xk, w_ref[ci, pi],
                                    preferred_element_type=jnp.float32)
    else:
        # TODO(synk): for very large patches, move p1 onto an "arbitrary" grid axis with
        # a VMEM accumulator instead of this dynamically-indexed in-kernel loop.
        def body(k, a):
            ci = k // p1
            pi = k % p1
            xk = x_ref[0, ci, 0, pi].astype(compute_dtype)
            return a + jnp.dot(xk, w_ref[ci, pi], preferred_element_type=jnp.float32)
        acc = lax.fori_loop(0, c * p1, body, acc)
    o_ref[0, 0] = (acc + b_ref[...]).astype(o_ref.dtype)


def patch_embed(x, weight, bias, patch_size, *, compute_dtype=jnp.bfloat16):
    """Fused 'b c (h p1) (w p2) -> b (h w) (p1 p2 c)' + Linear(patch_depth, model_dim).

    x:      (b, c, H, W)
    weight: (patch_depth, model_dim), patch_depth = p1 * p2 * c   (out = patch @ weight + bias)
    bias:   (model_dim,)
    """
    b, c, H, W = x.shape
    p1, p2 = patch_size
    assert H % p1 == 0 and W % p2 == 0, "image must tile exactly into patches"
    h, w = H // p1, W // p2
    patch_depth = p1 * p2 * c
    assert weight.shape == (patch_depth, bias.shape[0])
    model_dim = weight.shape[1]
    out_dtype = x.dtype
    cdt = jnp.dtype(compute_dtype)

    # Metadata-only dim splits (no HBM traffic): (b, c, h, p1, w, p2).
    x6 = x.reshape(b, c, h, p1, w, p2)

    # One-time relayout of the small weight so K decomposes into (c, p1) blocks of p2
    # contiguous rows:  w_r[ci, pi, qi, :] == weight[(pi*p2 + qi)*c + ci, :].
    # (In a real model this is done once at parameter-load time.)
    w_r = weight.reshape(p1, p2, c, model_dim).transpose(2, 0, 1, 3).astype(compute_dtype)
    b_r = bias.astype(jnp.float32).reshape(1, model_dim)

    # VMEM budget: double-buffered x slab + resident weight (counted x2: default
    # pipeline buffering; only one copy is ever filled since its index map is constant)
    # + resident bias + double-buffered output tile + headroom.
    x_blk = c * p1 * _round_up(w, 8) * _round_up(p2, 128) * x.dtype.itemsize
    w_res = c * p1 * _round_up(p2, 8) * _round_up(model_dim, 128) * cdt.itemsize
    b_res = 8 * _round_up(model_dim, 128) * 4
    o_blk = _round_up(w, 8) * _round_up(model_dim, 128) * jnp.dtype(out_dtype).itemsize
    vmem_bytes = 2 * x_blk + 2 * w_res + 2 * b_res + 2 * o_blk + (2 << 20)
    # TODO(synk): if this ever exceeds physical VMEM (huge patches * very wide images),
    # split p1 onto an "arbitrary" grid reduction axis instead of clamping.
    vmem_limit = int(min(max(vmem_bytes, 16 << 20), 100 << 20))

    kernel = functools.partial(_patch_linear_kernel, c=c, p1=p1,
                               compute_dtype=compute_dtype)

    out = pl.pallas_call(
        kernel,
        out_shape=jax.ShapeDtypeStruct((b, h, w, model_dim), out_dtype),
        grid_spec=pl.GridSpec(
            grid=(b, h),
            in_specs=[
                # Streamed activation slab: one (batch, patch-row) of the NCHW image.
                pl.BlockSpec((1, c, 1, p1, w, p2),
                             lambda bi, hi: (bi, 0, hi, 0, 0, 0)),
                # Resident weight / bias: constant index map -> DMA'd once, stays in VMEM.
                pl.BlockSpec((c, p1, p2, model_dim),
                             lambda bi, hi: (0, 0, 0, 0)),
                pl.BlockSpec((1, model_dim),
                             lambda bi, hi: (0, 0)),
            ],
            out_specs=pl.BlockSpec((1, 1, w, model_dim),
                                   lambda bi, hi: (bi, hi, 0, 0)),
        ),
        compiler_params=pltpu.CompilerParams(
            dimension_semantics=("parallel", "parallel"),
            vmem_limit_bytes=vmem_limit),
    )(x6, w_r, b_r)

    # (b, h, w, N) -> (b, h*w, N): adjacent-dim merge, metadata only.
    return out.reshape(b, h * w, model_dim)


if __name__ == "__main__":
    # Small shapes consistent with the module's structure (patch rearrange + Linear):
    #   patch_size=(4, 16), c=3, model_dim=128, image 2 x 3 x 32 x 128
    #   -> h=8, w=8, 64 patches/image, patch_depth=4*16*3=192, grid=(2, 8)=16 steps.
    patch_size = (4, 16)
    c = 3
    model_dim = 128
    b, H, W = 2, 32, 128
    p1, p2 = patch_size
    patch_depth = p1 * p2 * c

    key = jax.random.PRNGKey(0)
    kx, kw, kb = jax.random.split(key, 3)
    x = jax.random.normal(kx, (b, c, H, W), dtype=jnp.float32)
    # nn.Linear(patch_depth, model_dim)-style parameters (deterministic init).
    lin_w = jax.random.normal(kw, (patch_depth, model_dim), dtype=jnp.float32) * 0.02
    lin_b = jax.random.normal(kb, (model_dim,), dtype=jnp.float32) * 0.02

    fn = jax.jit(functools.partial(patch_embed, patch_size=patch_size))
    out = jax.block_until_ready(fn(x, lin_w, lin_b))

    # Reference in plain JAX (same rearrange + linear, f32).
    ref = x.reshape(b, c, H // p1, p1, W // p2, p2)
    ref = jnp.transpose(ref, (0, 2, 4, 3, 5, 1)).reshape(b, -1, patch_depth)
    ref = ref @ lin_w + lin_b

    assert out.shape == (b, (H // p1) * (W // p2), model_dim), out.shape
    # bf16 inputs with f32 accumulation vs the f32 reference -> loose tolerance.
    max_err = float(jnp.max(jnp.abs(out - ref)))
    assert jnp.allclose(out, ref, atol=2e-2, rtol=2e-2), max_err

    print("KERNEL_OK")
</pallas_src>

<mosaic_0001>
module attributes {stable_mosaic.version = 11 : i64} {
  func.func @_patch_linear_kernel(%arg0: i32, %arg1: i32, %arg2: memref<1x3x1x4x8x16xf32, #tpu.memory_space<vmem>>, %arg3: memref<3x4x16x128xbf16, #tpu.memory_space<vmem>>, %arg4: memref<1x128xf32, #tpu.memory_space<vmem>>, %arg5: memref<1x1x8x128xf32, #tpu.memory_space<vmem>>) attributes {dimension_semantics = [#tpu.dimension_semantics<parallel>, #tpu.dimension_semantics<parallel>], iteration_bounds = array<i64: 2, 8>, scalar_prefetch = 0 : i64, scratch_operands = 0 : i64, tpu.core_type = #tpu.core_type<tc>, window_params = [{transform_indices = @transform_0, window_bounds = array<i64: 1, 3, 1, 4, 8, 16>}, {pipeline_mode = #tpu.pipeline_mode<synchronous>, transform_indices = @transform_1, window_bounds = array<i64: 3, 4, 16, 128>}, {pipeline_mode = #tpu.pipeline_mode<synchronous>, transform_indices = @transform_2, window_bounds = array<i64: 1, 128>}, {transform_indices = @transform_3, window_bounds = array<i64: 1, 1, 8, 128>}]} {
    %cst = arith.constant 0.000000e+00 : f32
    %0 = vector.broadcast %cst : f32 to vector<8x128xf32>
    %c0 = arith.constant 0 : index
    %c0_0 = arith.constant 0 : index
    %c0_1 = arith.constant 0 : index
    %c0_2 = arith.constant 0 : index
    %c0_3 = arith.constant 0 : index
    %c0_4 = arith.constant 0 : index
    %1 = vector.load %arg2[%c0, %c0_0, %c0_1, %c0_2, %c0_3, %c0_4] : memref<1x3x1x4x8x16xf32, #tpu.memory_space<vmem>>, vector<1x1x1x1x8x16xf32>
    %2 = vector.shape_cast %1 : vector<1x1x1x1x8x16xf32> to vector<8x16xf32>
    %3 = arith.truncf %2 : vector<8x16xf32> to vector<8x16xbf16>
    %c0_5 = arith.constant 0 : index
    %c0_6 = arith.constant 0 : index
    %c0_7 = arith.constant 0 : index
    %c0_8 = arith.constant 0 : index
    %4 = vector.load %arg3[%c0_5, %c0_6, %c0_7, %c0_8] : memref<3x4x16x128xbf16, #tpu.memory_space<vmem>>, vector<1x1x16x128xbf16>
    %5 = vector.shape_cast %4 : vector<1x1x16x128xbf16> to vector<16x128xbf16>
    %cst_9 = arith.constant dense<0.000000e+00> : vector<8x128xf32>
    %6 = tpu.matmul %3, %5, %cst_9 {dimension_numbers = #tpu.dot_dimension_numbers<[1], [0], [0], [1], [0, 0, 1, 1], [], []>} : vector<8x16xbf16>, vector<16x128xbf16>, vector<8x128xf32> -> vector<8x128xf32>
    %7 = arith.addf %0, %6 : vector<8x128xf32>
    %c0_10 = arith.constant 0 : index
    %c0_11 = arith.constant 0 : index
    %c0_12 = arith.constant 0 : index
    %c1 = arith.constant 1 : index
    %c0_13 = arith.constant 0 : index
    %c0_14 = arith.constant 0 : index
    %8 = vector.load %arg2[%c0_10, %c0_11, %c0_12, %c1, %c0_13, %c0_14] : memref<1x3x1x4x8x16xf32, #tpu.memory_space<vmem>>, vector<1x1x1x1x8x16xf32>
    %9 = vector.shape_cast %8 : vector<1x1x1x1x8x16xf32> to vector<8x16xf32>
    %10 = arith.truncf %9 : vector<8x16xf32> to vector<8x16xbf16>
    %c0_15 = arith.constant 0 : index
    %c1_16 = arith.constant 1 : index
    %c0_17 = arith.constant 0 : index
    %c0_18 = arith.constant 0 : index
    %11 = vector.load %arg3[%c0_15, %c1_16, %c0_17, %c0_18] : memref<3x4x16x128xbf16, #tpu.memory_space<vmem>>, vector<1x1x16x128xbf16>
    %12 = vector.shape_cast %11 : vector<1x1x16x128xbf16> to vector<16x128xbf16>
    %cst_19 = arith.constant dense<0.000000e+00> : vector<8x128xf32>
    %13 = tpu.matmul %10, %12, %cst_19 {dimension_numbers = #tpu.dot_dimension_numbers<[1], [0], [0], [1], [0, 0, 1, 1], [], []>} : vector<8x16xbf16>, vector<16x128xbf16>, vector<8x128xf32> -> vector<8x128xf32>
    %14 = arith.addf %7, %13 : vector<8x128xf32>
    %c0_20 = arith.constant 0 : index
    %c0_21 = arith.constant 0 : index
    %c0_22 = arith.constant 0 : index
    %c2 = arith.constant 2 : index
    %c0_23 = arith.constant 0 : index
    %c0_24 = arith.constant 0 : index
    %15 = vector.load %arg2[%c0_20, %c0_21, %c0_22, %c2, %c0_23, %c0_24] : memref<1x3x1x4x8x16xf32, #tpu.memory_space<vmem>>, vector<1x1x1x1x8x16xf32>
    %16 = vector.shape_cast %15 : vector<1x1x1x1x8x16xf32> to vector<8x16xf32>
    %17 = arith.truncf %16 : vector<8x16xf32> to vector<8x16xbf16>
    %c0_25 = arith.constant 0 : index
    %c2_26 = arith.constant 2 : index
    %c0_27 = arith.constant 0 : index
    %c0_28 = arith.constant 0 : index
    %18 = vector.load %arg3[%c0_25, %c2_26, %c0_27, %c0_28] : memref<3x4x16x128xbf16, #tpu.memory_space<vmem>>, vector<1x1x16x128xbf16>
    %19 = vector.shape_cast %18 : vector<1x1x16x128xbf16> to vector<16x128xbf16>
    %cst_29 = arith.constant dense<0.000000e+00> : vector<8x128xf32>
    %20 = tpu.matmul %17, %19, %cst_29 {dimension_numbers = #tpu.dot_dimension_numbers<[1], [0], [0], [1], [0, 0, 1, 1], [], []>} : vector<8x16xbf16>, vector<16x128xbf16>, vector<8x128xf32> -> vector<8x128xf32>
    %21 = arith.addf %14, %20 : vector<8x128xf32>
    %c0_30 = arith.constant 0 : index
    %c0_31 = arith.constant 0 : index
    %c0_32 = arith.constant 0 : index
    %c3 = arith.constant 3 : index
    %c0_33 = arith.constant 0 : index
    %c0_34 = arith.constant 0 : index
    %22 = vector.load %arg2[%c0_30, %c0_31, %c0_32, %c3, %c0_33, %c0_34] : memref<1x3x1x4x8x16xf32, #tpu.memory_space<vmem>>, vector<1x1x1x1x8x16xf32>
    %23 = vector.shape_cast %22 : vector<1x1x1x1x8x16xf32> to vector<8x16xf32>
    %24 = arith.truncf %23 : vector<8x16xf32> to vector<8x16xbf16>
    %c0_35 = arith.constant 0 : index
    %c3_36 = arith.constant 3 : index
    %c0_37 = arith.constant 0 : index
    %c0_38 = arith.constant 0 : index
    %25 = vector.load %arg3[%c0_35, %c3_36, %c0_37, %c0_38] : memref<3x4x16x128xbf16, #tpu.memory_space<vmem>>, vector<1x1x16x128xbf16>
    %26 = vector.shape_cast %25 : vector<1x1x16x128xbf16> to vector<16x128xbf16>
    %cst_39 = arith.constant dense<0.000000e+00> : vector<8x128xf32>
    %27 = tpu.matmul %24, %26, %cst_39 {dimension_numbers = #tpu.dot_dimension_numbers<[1], [0], [0], [1], [0, 0, 1, 1], [], []>} : vector<8x16xbf16>, vector<16x128xbf16>, vector<8x128xf32> -> vector<8x128xf32>
    %28 = arith.addf %21, %27 : vector<8x128xf32>
    %c0_40 = arith.constant 0 : index
    %c1_41 = arith.constant 1 : index
    %c0_42 = arith.constant 0 : index
    %c0_43 = arith.constant 0 : index
    %c0_44 = arith.constant 0 : index
    %c0_45 = arith.constant 0 : index
    %29 = vector.load %arg2[%c0_40, %c1_41, %c0_42, %c0_43, %c0_44, %c0_45] : memref<1x3x1x4x8x16xf32, #tpu.memory_space<vmem>>, vector<1x1x1x1x8x16xf32>
    %30 = vector.shape_cast %29 : vector<1x1x1x1x8x16xf32> to vector<8x16xf32>
    %31 = arith.truncf %30 : vector<8x16xf32> to vector<8x16xbf16>
    %c1_46 = arith.constant 1 : index
    %c0_47 = arith.constant 0 : index
    %c0_48 = arith.constant 0 : index
    %c0_49 = arith.constant 0 : index
    %32 = vector.load %arg3[%c1_46, %c0_47, %c0_48, %c0_49] : memref<3x4x16x128xbf16, #tpu.memory_space<vmem>>, vector<1x1x16x128xbf16>
    %33 = vector.shape_cast %32 : vector<1x1x16x128xbf16> to vector<16x128xbf16>
    %cst_50 = arith.constant dense<0.000000e+00> : vector<8x128xf32>
    %34 = tpu.matmul %31, %33, %cst_50 {dimension_numbers = #tpu.dot_dimension_numbers<[1], [0], [0], [1], [0, 0, 1, 1], [], []>} : vector<8x16xbf16>, vector<16x128xbf16>, vector<8x128xf32> -> vector<8x128xf32>
    %35 = arith.addf %28, %34 : vector<8x128xf32>
    %c0_51 = arith.constant 0 : index
    %c1_52 = arith.constant 1 : index
    %c0_53 = arith.constant 0 : index
    %c1_54 = arith.constant 1 : index
    %c0_55 = arith.constant 0 : index
    %c0_56 = arith.constant 0 : index
    %36 = vector.load %arg2[%c0_51, %c1_52, %c0_53, %c1_54, %c0_55, %c0_56] : memref<1x3x1x4x8x16xf32, #tpu.memory_space<vmem>>, vector<1x1x1x1x8x16xf32>
    %37 = vector.shape_cast %36 : vector<1x1x1x1x8x16xf32> to vector<8x16xf32>
    %38 = arith.truncf %37 : vector<8x16xf32> to vector<8x16xbf16>
    %c1_57 = arith.constant 1 : index
    %c1_58 = arith.constant 1 : index
    %c0_59 = arith.constant 0 : index
    %c0_60 = arith.constant 0 : index
    %39 = vector.load %arg3[%c1_57, %c1_58, %c0_59, %c0_60] : memref<3x4x16x128xbf16, #tpu.memory_space<vmem>>, vector<1x1x16x128xbf16>
    %40 = vector.shape_cast %39 : vector<1x1x16x128xbf16> to vector<16x128xbf16>
    %cst_61 = arith.constant dense<0.000000e+00> : vector<8x128xf32>
    %41 = tpu.matmul %38, %40, %cst_61 {dimension_numbers = #tpu.dot_dimension_numbers<[1], [0], [0], [1], [0, 0, 1, 1], [], []>} : vector<8x16xbf16>, vector<16x128xbf16>, vector<8x128xf32> -> vector<8x128xf32>
    %42 = arith.addf %35, %41 : vector<8x128xf32>
    %c0_62 = arith.constant 0 : index
    %c1_63 = arith.constant 1 : index
    %c0_64 = arith.constant 0 : index
    %c2_65 = arith.constant 2 : index
    %c0_66 = arith.constant 0 : index
    %c0_67 = arith.constant 0 : index
    %43 = vector.load %arg2[%c0_62, %c1_63, %c0_64, %c2_65, %c0_66, %c0_67] : memref<1x3x1x4x8x16xf32, #tpu.memory_space<vmem>>, vector<1x1x1x1x8x16xf32>
    %44 = vector.shape_cast %43 : vector<1x1x1x1x8x16xf32> to vector<8x16xf32>
    %45 = arith.truncf %44 : vector<8x16xf32> to vector<8x16xbf16>
    %c1_68 = arith.constant 1 : index
    %c2_69 = arith.constant 2 : index
    %c0_70 = arith.constant 0 : index
    %c0_71 = arith.constant 0 : index
    %46 = vector.load %arg3[%c1_68, %c2_69, %c0_70, %c0_71] : memref<3x4x16x128xbf16, #tpu.memory_space<vmem>>, vector<1x1x16x128xbf16>
    %47 = vector.shape_cast %46 : vector<1x1x16x128xbf16> to vector<16x128xbf16>
    %cst_72 = arith.constant dense<0.000000e+00> : vector<8x128xf32>
    %48 = tpu.matmul %45, %47, %cst_72 {dimension_numbers = #tpu.dot_dimension_numbers<[1], [0], [0], [1], [0, 0, 1, 1], [], []>} : vector<8x16xbf16>, vector<16x128xbf16>, vector<8x128xf32> -> vector<8x128xf32>
    %49 = arith.addf %42, %48 : vector<8x128xf32>
    %c0_73 = arith.constant 0 : index
    %c1_74 = arith.constant 1 : index
    %c0_75 = arith.constant 0 : index
    %c3_76 = arith.constant 3 : index
    %c0_77 = arith.constant 0 : index
    %c0_78 = arith.constant 0 : index
    %50 = vector.load %arg2[%c0_73, %c1_74, %c0_75, %c3_76, %c0_77, %c0_78] : memref<1x3x1x4x8x16xf32, #tpu.memory_space<vmem>>, vector<1x1x1x1x8x16xf32>
    %51 = vector.shape_cast %50 : vector<1x1x1x1x8x16xf32> to vector<8x16xf32>
    %52 = arith.truncf %51 : vector<8x16xf32> to vector<8x16xbf16>
    %c1_79 = arith.constant 1 : index
    %c3_80 = arith.constant 3 : index
    %c0_81 = arith.constant 0 : index
    %c0_82 = arith.constant 0 : index
    %53 = vector.load %arg3[%c1_79, %c3_80, %c0_81, %c0_82] : memref<3x4x16x128xbf16, #tpu.memory_space<vmem>>, vector<1x1x16x128xbf16>
    %54 = vector.shape_cast %53 : vector<1x1x16x128xbf16> to vector<16x128xbf16>
    %cst_83 = arith.constant dense<0.000000e+00> : vector<8x128xf32>
    %55 = tpu.matmul %52, %54, %cst_83 {dimension_numbers = #tpu.dot_dimension_numbers<[1], [0], [0], [1], [0, 0, 1, 1], [], []>} : vector<8x16xbf16>, vector<16x128xbf16>, vector<8x128xf32> -> vector<8x128xf32>
    %56 = arith.addf %49, %55 : vector<8x128xf32>
    %c0_84 = arith.constant 0 : index
    %c2_85 = arith.constant 2 : index
    %c0_86 = arith.constant 0 : index
    %c0_87 = arith.constant 0 : index
    %c0_88 = arith.constant 0 : index
    %c0_89 = arith.constant 0 : index
    %57 = vector.load %arg2[%c0_84, %c2_85, %c0_86, %c0_87, %c0_88, %c0_89] : memref<1x3x1x4x8x16xf32, #tpu.memory_space<vmem>>, vector<1x1x1x1x8x16xf32>
    %58 = vector.shape_cast %57 : vector<1x1x1x1x8x16xf32> to vector<8x16xf32>
    %59 = arith.truncf %58 : vector<8x16xf32> to vector<8x16xbf16>
    %c2_90 = arith.constant 2 : index
    %c0_91 = arith.constant 0 : index
    %c0_92 = arith.constant 0 : index
    %c0_93 = arith.constant 0 : index
    %60 = vector.load %arg3[%c2_90, %c0_91, %c0_92, %c0_93] : memref<3x4x16x128xbf16, #tpu.memory_space<vmem>>, vector<1x1x16x128xbf16>
    %61 = vector.shape_cast %60 : vector<1x1x16x128xbf16> to vector<16x128xbf16>
    %cst_94 = arith.constant dense<0.000000e+00> : vector<8x128xf32>
    %62 = tpu.matmul %59, %61, %cst_94 {dimension_numbers = #tpu.dot_dimension_numbers<[1], [0], [0], [1], [0, 0, 1, 1], [], []>} : vector<8x16xbf16>, vector<16x128xbf16>, vector<8x128xf32> -> vector<8x128xf32>
    %63 = arith.addf %56, %62 : vector<8x128xf32>
    %c0_95 = arith.constant 0 : index
    %c2_96 = arith.constant 2 : index
    %c0_97 = arith.constant 0 : index
    %c1_98 = arith.constant 1 : index
    %c0_99 = arith.constant 0 : index
    %c0_100 = arith.constant 0 : index
    %64 = vector.load %arg2[%c0_95, %c2_96, %c0_97, %c1_98, %c0_99, %c0_100] : memref<1x3x1x4x8x16xf32, #tpu.memory_space<vmem>>, vector<1x1x1x1x8x16xf32>
    %65 = vector.shape_cast %64 : vector<1x1x1x1x8x16xf32> to vector<8x16xf32>
    %66 = arith.truncf %65 : vector<8x16xf32> to vector<8x16xbf16>
    %c2_101 = arith.constant 2 : index
    %c1_102 = arith.constant 1 : index
    %c0_103 = arith.constant 0 : index
    %c0_104 = arith.constant 0 : index
    %67 = vector.load %arg3[%c2_101, %c1_102, %c0_103, %c0_104] : memref<3x4x16x128xbf16, #tpu.memory_space<vmem>>, vector<1x1x16x128xbf16>
    %68 = vector.shape_cast %67 : vector<1x1x16x128xbf16> to vector<16x128xbf16>
    %cst_105 = arith.constant dense<0.000000e+00> : vector<8x128xf32>
    %69 = tpu.matmul %66, %68, %cst_105 {dimension_numbers = #tpu.dot_dimension_numbers<[1], [0], [0], [1], [0, 0, 1, 1], [], []>} : vector<8x16xbf16>, vector<16x128xbf16>, vector<8x128xf32> -> vector<8x128xf32>
    %70 = arith.addf %63, %69 : vector<8x128xf32>
    %c0_106 = arith.constant 0 : index
    %c2_107 = arith.constant 2 : index
    %c0_108 = arith.constant 0 : index
    %c2_109 = arith.constant 2 : index
    %c0_110 = arith.constant 0 : index
    %c0_111 = arith.constant 0 : index
    %71 = vector.load %arg2[%c0_106, %c2_107, %c0_108, %c2_109, %c0_110, %c0_111] : memref<1x3x1x4x8x16xf32, #tpu.memory_space<vmem>>, vector<1x1x1x1x8x16xf32>
    %72 = vector.shape_cast %71 : vector<1x1x1x1x8x16xf32> to vector<8x16xf32>
    %73 = arith.truncf %72 : vector<8x16xf32> to vector<8x16xbf16>
    %c2_112 = arith.constant 2 : index
    %c2_113 = arith.constant 2 : index
    %c0_114 = arith.constant 0 : index
    %c0_115 = arith.constant 0 : index
    %74 = vector.load %arg3[%c2_112, %c2_113, %c0_114, %c0_115] : memref<3x4x16x128xbf16, #tpu.memory_space<vmem>>, vector<1x1x16x128xbf16>
    %75 = vector.shape_cast %74 : vector<1x1x16x128xbf16> to vector<16x128xbf16>
    %cst_116 = arith.constant dense<0.000000e+00> : vector<8x128xf32>
    %76 = tpu.matmul %73, %75, %cst_116 {dimension_numbers = #tpu.dot_dimension_numbers<[1], [0], [0], [1], [0, 0, 1, 1], [], []>} : vector<8x16xbf16>, vector<16x128xbf16>, vector<8x128xf32> -> vector<8x128xf32>
    %77 = arith.addf %70, %76 : vector<8x128xf32>
    %c0_117 = arith.constant 0 : index
    %c2_118 = arith.constant 2 : index
    %c0_119 = arith.constant 0 : index
    %c3_120 = arith.constant 3 : index
    %c0_121 = arith.constant 0 : index
    %c0_122 = arith.constant 0 : index
    %78 = vector.load %arg2[%c0_117, %c2_118, %c0_119, %c3_120, %c0_121, %c0_122] : memref<1x3x1x4x8x16xf32, #tpu.memory_space<vmem>>, vector<1x1x1x1x8x16xf32>
    %79 = vector.shape_cast %78 : vector<1x1x1x1x8x16xf32> to vector<8x16xf32>
    %80 = arith.truncf %79 : vector<8x16xf32> to vector<8x16xbf16>
    %c2_123 = arith.constant 2 : index
    %c3_124 = arith.constant 3 : index
    %c0_125 = arith.constant 0 : index
    %c0_126 = arith.constant 0 : index
    %81 = vector.load %arg3[%c2_123, %c3_124, %c0_125, %c0_126] : memref<3x4x16x128xbf16, #tpu.memory_space<vmem>>, vector<1x1x16x128xbf16>
    %82 = vector.shape_cast %81 : vector<1x1x16x128xbf16> to vector<16x128xbf16>
    %cst_127 = arith.constant dense<0.000000e+00> : vector<8x128xf32>
    %83 = tpu.matmul %80, %82, %cst_127 {dimension_numbers = #tpu.dot_dimension_numbers<[1], [0], [0], [1], [0, 0, 1, 1], [], []>} : vector<8x16xbf16>, vector<16x128xbf16>, vector<8x128xf32> -> vector<8x128xf32>
    %84 = arith.addf %77, %83 : vector<8x128xf32>
    %c0_128 = arith.constant 0 : index
    %c0_129 = arith.constant 0 : index
    %85 = vector.load %arg4[%c0_128, %c0_129] : memref<1x128xf32, #tpu.memory_space<vmem>>, vector<1x128xf32>
    %86 = vector.broadcast %85 : vector<1x128xf32> to vector<8x128xf32>
    %87 = arith.addf %84, %86 : vector<8x128xf32>
    %c0_130 = arith.constant 0 : index
    %c0_131 = arith.constant 0 : index
    %c0_132 = arith.constant 0 : index
    %c0_133 = arith.constant 0 : index
    %88 = vector.load %arg5[%c0_130, %c0_131, %c0_132, %c0_133] : memref<1x1x8x128xf32, #tpu.memory_space<vmem>>, vector<1x1x8x128xf32>
    %89 = vector.shape_cast %88 : vector<1x1x8x128xf32> to vector<8x128xf32>
    %90 = vector.shape_cast %87 : vector<8x128xf32> to vector<1x1x8x128xf32>
    tpu.vector_store %arg5[%c0_130, %c0_131, %c0_132, %c0_133], %90 {strides = array<i32>} : memref<1x1x8x128xf32, #tpu.memory_space<vmem>>, vector<1x1x8x128xf32>,
    return
  }
  func.func @transform_0(%arg0: i32, %arg1: i32) -> (i32, i32, i32, i32, i32, i32) {
    %c0_i32 = arith.constant 0 : i32
    %c0_i32_0 = arith.constant 0 : i32
    %c0_i32_1 = arith.constant 0 : i32
    %c0_i32_2 = arith.constant 0 : i32
    %c0_i32_3 = arith.constant 0 : i32
    return %arg0, %c0_i32, %arg1, %c0_i32_0, %c0_i32_1, %c0_i32_2 : i32, i32, i32, i32, i32, i32
  }
  func.func @transform_1(%arg0: i32, %arg1: i32) -> (i32, i32, i32, i32) {
    %c0_i32 = arith.constant 0 : i32
    %c0_i32_0 = arith.constant 0 : i32
    %c0_i32_1 = arith.constant 0 : i32
    %c0_i32_2 = arith.constant 0 : i32
    %c0_i32_3 = arith.constant 0 : i32
    return %c0_i32, %c0_i32_0, %c0_i32_1, %c0_i32_2 : i32, i32, i32, i32
  }
  func.func @transform_2(%arg0: i32, %arg1: i32) -> (i32, i32) {
    %c0_i32 = arith.constant 0 : i32
    %c0_i32_0 = arith.constant 0 : i32
    %c0_i32_1 = arith.constant 0 : i32
    return %c0_i32, %c0_i32_0 : i32, i32
  }
  func.func @transform_3(%arg0: i32, %arg1: i32) -> (i32, i32, i32, i32) {
    %c0_i32 = arith.constant 0 : i32
    %c0_i32_0 = arith.constant 0 : i32
    %c0_i32_1 = arith.constant 0 : i32
    return %arg0, %arg1, %c0_i32, %c0_i32_0 : i32, i32, i32, i32
  }
}

</mosaic_0001>

<bundles_post_ra>
// kernel: patch_embed.1
= control target key start
LH: loop header
LB: loop body
LE: loop exit
PB: predicated region body
PF: predicated region fallthrough
CT: control target
= control target key end

     0   :  { %8 = vsyncpa [#allocation4], 0  ;;  %s1666_s0 = inlined_call_operand.vmem [shape: f32[2,3,8,4,8,16], index: 0, kind: input, shape index: {}]   ;;  %s1667_s1 = inlined_call_operand.vmem [shape: bf16[3,4,16,128], index: 1, kind: input, shape index: {}]   ;;  %s1668_s2 = inlined_call_operand.vmem [shape: f32[1,128], index: 2, kind: input, shape index: {}]   ;;  %s1669_s3 = inlined_call_operand.hbm [shape: f32[2,8,8,128], index: 3, kind: output, shape index: {}]  }
   0x1   :  { %10 = vsyncpa [#allocation4 + $0x1], 0  ;;  %s1416_s12 = smov 0   ;;  %s1418_s13 = smov 0  }
   0x2   :  { %s1420_s14 = smov 0   ;;  %s1422_s15 = smov 0  }
   0x3   :  { %s1424_s16 = smov 0   ;;  %s1426_s17 = smov 0  }
   0x4   :  { %s1428_s18 = smov 0   ;;  %s1430_s19 = smov 0  }
   0x5 LB: > { %s1042_s20 = sadd.s32 4294967295, %s1391_s19   ;;  %s1043_s21 = sadd.s32 4294967294, %s1391_s19   ;;  %s1391_s19 = sphi %s1430_s19, %s16_s19   ;;  %s1387_s18 = sphi %s1428_s18, %s1679_s18   ;;  %s1383_s17 = sphi %s1426_s17, %s1678_s17   ;;  %s1379_s16 = sphi %s1424_s16, %s1677_s16   ;;  %s1375_s15 = sphi %s1422_s15, %s1676_s15   ;;  %s1371_s14 = sphi %s1420_s14, %s1675_s14   ;;  %s1367_s13 = sphi %s1418_s13, %s1674_s13   ;;  %s1363_s12 = sphi %s1416_s12, %s1673_s12  }
   0x6   : > { %s25_s22 = sadd.s32 1, %s1383_s17  ;;  %s28_s23 = sadd.s32 1, %s1387_s18 }
   0x7   : > { %p26_p0 = scmp.ge.s32.totalorder %s25_s22, 8  ;;  %p44_p1 = scmp.ne.s32.totalorder %s1371_s14, %s1367_s13 }
   0x8   : > { %p45_p2 = scmp.eq.s32.totalorder %s1391_s19, 0  ;;  %p118_p5 = scmp.eq.s32.totalorder %s1042_s20, 15 }
   0x9   : > { %s1681_s22 = smov (%p26_p0, %s25_s22), 0  ;;  %s1683_s23 = smov (!%p26_p0, %s28_s23), %s1387_s18 }
   0xa   : > { %s33_s24 = ssub.s32 %s1383_s17, %s1681_s22  ;;  %p1468_p3 = por %p45_p2, %p44_p1 }
   0xb   : > { %p30_p4 = scmp.ge.s32.totalorder %s1683_s23, 2  ;;  %p123_p6 = scmp.ne.s32.totalorder %s1367_s13, %s1363_s12 }
   0xc   : > { %p124_p7 = scmp.eq.s32.totalorder %s1043_s21, 15  ;;  %p1476_p8 = por %p118_p5, %p44_p1 }
   0xd   : > { %s1685_s23 = smov (%p30_p4, %s1683_s23), 0  ;;  %s37_s30 = sadd.s32 1, %s1371_s14 }
   0xe   : > { %p1480_p9 = por %p124_p7, %p123_p6  ;;  %s32_s28 = ssub.s32 %s1387_s18, %s1685_s23 }
   0xf   : > { %s34_s29 = sor.u32 %s33_s24, %s32_s28  ;;  %p1045_p11 = scmp.ge.s32.totalorder %s1391_s19, 16 }
  0x10   : > { %p35_p10 = scmp.eq.s32.totalorder %s34_s29, 0 }
  0x11   : > { %146 = sbr.rel (%p1045_p11) target bundleno = 38 (0x26), region = 24 }
  0x12   : > { %s1488_s4 = scalar_select %p35_p10, %s1371_s14, %s37_s30  }
  0x18   : > { %149 = sbr.rel (!%p1468_p3) target bundleno = 38 (0x26), region = 28  ;;  %s151_s5 = sand.u32 (%p1468_p3), 1, %s1371_s14  }
  0x19   : > { %s1209_s6 = smul.u32 (%p1468_p3), 96, %s151_s5  ;;  %s1046_s7 = sshll.u32 (%p1468_p3), %s1383_s17, 2 }
  0x1a   : > { %s1210_s8 = smul.u32 (%p1468_p3), 96, %s1387_s18 }
  0x1b   : > { %s153_s24 = scalar_lea.vmem (%p1468_p3), [#allocation2], %s1209_s6 }
  0x1c   : > { %s156_s9 = sadd.s32 (%p1468_p3), %s1210_s8, %s1046_s7 }
  0x1d   : > { %s1047_s10 = sshll.u32 (%p1468_p3), %s156_s9, 3 }
  0x1e   : > { %s158_s21 = scalar_lea.vmem (%p1468_p3), %s1666_s0, %s1047_s10 }
  0x1f   : > { %v208_v0 = vld [vmem:[%s158_s21] sm:$0xff]  ;;  %v210_v1 = vld [vmem:[%s158_s21 + $0x8] sm:$0xff]  ;;  %v212_v2 = vld [vmem:[%s158_s21 + $0x10] sm:$0xff] }
  0x20   : > { %209 = vst [vmem:[%s153_s24] sm:$0xff] %v208_v0  ;;  %211 = vst [vmem:[%s153_s24 + $0x8] sm:$0xff] %v210_v1  ;;  %v214_v3 = vld [vmem:[%s158_s21 + $0x18] sm:$0xff]  ;;  %v216_v4 = vld [vmem:[%s158_s21 + $0x100] sm:$0xff] }
  0x21   : > { %213 = vst [vmem:[%s153_s24 + $0x10] sm:$0xff] %v212_v2  ;;  %v218_v5 = vld [vmem:[%s158_s21 + $0x108] sm:$0xff]  ;;  %215 = vst [vmem:[%s153_s24 + $0x18] sm:$0xff] %v214_v3  ;;  %v220_v6 = vld [vmem:[%s158_s21 + $0x110] sm:$0xff] }
  0x22   : > { %217 = vst [vmem:[%s153_s24 + $0x20] sm:$0xff] %v216_v4  ;;  %219 = vst [vmem:[%s153_s24 + $0x28] sm:$0xff] %v218_v5  ;;  %v222_v7 = vld [vmem:[%s158_s21 + $0x118] sm:$0xff]  ;;  %v224_v8 = vld [vmem:[%s158_s21 + $0x200] sm:$0xff] }
  0x23   : > { %221 = vst [vmem:[%s153_s24 + $0x30] sm:$0xff] %v220_v6  ;;  %223 = vst [vmem:[%s153_s24 + $0x38] sm:$0xff] %v222_v7  ;;  %v226_v9 = vld [vmem:[%s158_s21 + $0x208] sm:$0xff]  ;;  %v228_v10 = vld [vmem:[%s158_s21 + $0x210] sm:$0xff] }
  0x24   : > { %225 = vst [vmem:[%s153_s24 + $0x40] sm:$0xff] %v224_v8  ;;  %v230_v11 = vld [vmem:[%s158_s21 + $0x218] sm:$0xff]  ;;  %227 = vst [vmem:[%s153_s24 + $0x48] sm:$0xff] %v226_v9 }
  0x25   : > { %229 = vst [vmem:[%s153_s24 + $0x50] sm:$0xff] %v228_v10  ;;  %231 = vst [vmem:[%s153_s24 + $0x58] sm:$0xff] %v230_v11 }
  0x26 PF: > { %p1048_p12 = scmp.ge.s32.totalorder %s1391_s19, 1  ;;  %p236_p13 = scmp.lt.s32.totalorder %s1391_s19, 17 }
  0x28   : > { %p237_p0 = pnand %p1048_p12, %p236_p13 }
  0x29   : > { %v1285_v12 = vld [vmem:[%s1667_s1 + $0x8] sm:$0xff] (!%p237_p0)   ;;  %v1393_v13 = vmov (!%p237_p0), 0.0   ;;  %v1286_v14 = vld [vmem:[%s1667_s1] sm:$0xff] (!%p237_p0)   ;;  %vm1394_vm0 = vmmov (!%p237_p0), 0   ;;  %s1512_s5 = sand.u32 (!%p237_p0), 1, %s1367_s13   ;;  %v1287_v15 = vld [vmem:[%s1667_s1 + $0x10] sm:$0xff] (!%p237_p0)  }
  0x2a   : > { %240 = sbr.rel (%p237_p0) target bundleno = 321 (0x141), region = 66  ;;  %1137 = vmatprep.subr.bf16.mxu0 (!%p237_p0), %v1393_v13  ;;  %1143 = vmatprep.subr.bf16.mxu1 (!%p237_p0), %v1393_v13  ;;  %vm283_vm1 = vcmask (!%p237_p0), 130048   ;;  %v1288_v18 = vld [vmem:[%s1667_s1 + $0x18] sm:$0xff] (!%p237_p0)   ;;  %v1289_v25 = vld [vmem:[%s1667_s1 + $0x20] sm:$0xff] (!%p237_p0)   ;;  %v1290_v26 = vld [vmem:[%s1667_s1 + $0x28] sm:$0xff] (!%p237_p0)   ;;  %s1109_s28 = sshll.u32 (!%p237_p0), %s1379_s16, 3 }
  0x2b   : > { %1138 = vmatpush3.bf16.msra.mxu0 (!%p237_p0), %v1285_v12  ;;  %1139 = vmatprep.mubr.msk.bf16.mxu0 (!%p237_p0), %vm1394_vm0, %v1393_v13  ;;  %s1211_s6 = smul.u32 (!%p237_p0), 96, %s1512_s5  ;;  %v1291_v31 = vld [vmem:[%s1667_s1 + $0x30] sm:$0xff] (!%p237_p0)   ;;  %v1292_v32 = vld [vmem:[%s1667_s1 + $0x38] sm:$0xff] (!%p237_p0)   ;;  %v1293_v37 = vld [vmem:[%s1667_s1 + $0x40] sm:$0xff] (!%p237_p0)   ;;  %s957_s29 = sadd.s32 (!%p237_p0), %s1375_s15, %s1109_s28 }
  0x2c   : > { %1144 = vmatpush3.bf16.msra.mxu1 (!%p237_p0), %v1286_v14  ;;  %1145 = vmatprep.mubr.msk.bf16.mxu1 (!%p237_p0), %vm1394_vm0, %v1393_v13  ;;  %v1294_v38 = vld [vmem:[%s1667_s1 + $0x48] sm:$0xff] (!%p237_p0)   ;;  %v1295_v43 = vld [vmem:[%s1667_s1 + $0x50] sm:$0xff] (!%p237_p0)   ;;  %v1296_v44 = vld [vmem:[%s1667_s1 + $0x58] sm:$0xff] (!%p237_p0)   ;;  %s1110_s7 = sshll.u32 (!%p237_p0), %s957_s29, 7  ;;  %s946_s20 = scalar_lea.sflag (!%p237_p0), [#allocation4], %s1512_s5 }
  0x2d   : > { %1149 = vmatprep.subr.bf16.mxu0 (!%p237_p0), %v1393_v13  ;;  %1155 = vmatprep.subr.bf16.mxu1 (!%p237_p0), %v1393_v13  ;;  %s1522_s9 = scalar_lea.vmem (!%p237_p0), [#allocation2], %s1211_s6  ;;  %s1612_s11 = scalar_lea.hbm (!%p237_p0), %s1669_s3, %s1110_s7 }
  0x2e   : > { %v1050_v16 = vld [vmem:[%s1522_s9 + $0x8] sm:$0xff] (!%p237_p0)  ;;  %v267_v17 = vld [vmem:[%s1522_s9] sm:$0xff] (!%p237_p0)  ;;  %v1057_v21 = vld [vmem:[%s1522_s9 + $0x10] sm:$0xff] (!%p237_p0)  ;;  %s1395_s24 = smov (!%p237_p0), [#allocation3]  }
  0x2f   : > { %v273_v19 = vpack.c.bf16 (!%p237_p0), %v1050_v16, %v1050_v16  ;;  %v268_v20 = vpack.c.bf16 (!%p237_p0), %v267_v17, %v267_v17  ;;  %v1062_v22 = vld [vmem:[%s1522_s9 + $0x18] sm:$0xff] (!%p237_p0)  ;;  %v378_v23 = vpack.c.bf16 (!%p237_p0), %v1057_v21, %v1057_v21  ;;  %v1067_v27 = vld [vmem:[%s1522_s9 + $0x20] sm:$0xff] (!%p237_p0)  ;;  %v1072_v28 = vld [vmem:[%s1522_s9 + $0x28] sm:$0xff] (!%p237_p0)  ;;  %s1301_s25 = sshll.u32 (!%p237_p0), %s1395_s24, 4  ;;  %s1302_s25 = int_to_ptr.vmem [resolvable:$false] %s1301_s25 }
  0x30   : > { %v434_v24 = vpack.c.bf16 (!%p237_p0), %v1062_v22, %v1062_v22  ;;  %v490_v29 = vpack.c.bf16 (!%p237_p0), %v1067_v27, %v1067_v27  ;;  %v546_v30 = vpack.c.bf16 (!%p237_p0), %v1072_v28, %v1072_v28  ;;  %v1077_v33 = vld [vmem:[%s1522_s9 + $0x30] sm:$0xff] (!%p237_p0)  ;;  %v1082_v34 = vld [vmem:[%s1522_s9 + $0x38] sm:$0xff] (!%p237_p0)  ;;  %v1087_v39 = vld [vmem:[%s1522_s9 + $0x40] sm:$0xff] (!%p237_p0) }
  0x31   : > { %1140 = vmatmul.mubr.msk.bf16.vlgmr.msra.gmra.mrb[0].mxu0 %vm283_vm1, %v273_v19  ;;  %1146 = vmatmul.mubr.msk.bf16.vlgmr.msra.gmra.mrb[0].mxu1 %vm283_vm1, %v268_v20  ;;  %v602_v35 = vpack.c.bf16 %v1077_v33, %v1077_v33  ;;  %v658_v36 = vpack.c.bf16 %v1082_v34, %v1082_v34  ;;  %v1092_v40 = vld [vmem:[%s1522_s9 + $0x48] sm:$0xff]  ;;  %v714_v41 = vpack.c.bf16 %v1087_v39, %v1087_v39  ;;  %v1097_v45 = vld [vmem:[%s1522_s9 + $0x50] sm:$0xff]  ;;  %v1102_v46 = vld [vmem:[%s1522_s9 + $0x58] sm:$0xff]  ;;  %s1049_s9 = sshll.u32 %s1512_s5, 3 }
  0x32   : > { %1150 = vmatpush3.bf16.msra.mxu0 %v1287_v15  ;;  %1156 = vmatpush3.bf16.msra.mxu1 %v1288_v18  ;;  %v770_v42 = vpack.c.bf16 %v1092_v40, %v1092_v40  ;;  %v826_v47 = vpack.c.bf16 %v1097_v45, %v1097_v45  ;;  %v882_v48 = vpack.c.bf16 %v1102_v46, %v1102_v46  ;;  %v1107_v39 = vld [vmem:[%s1668_s2] ss:$0 sm:$0xff]  ;;  %s265_s8 = scalar_lea.vmem [#allocation3], %s1049_s9  ;;  %s1303_s9 = scalar_lea.vmem %s1302_s25, 256 }
  0x33   : > { %1151 = vmatprep.mubr.msk.bf16.mxu0 %vm1394_vm0, %v1393_v13  ;;  %1157 = vmatprep.mubr.msk.bf16.mxu1 %vm1394_vm0, %v1393_v13  ;;  %s961_s10 = sshll.u32 %s265_s8, 4  ;;  %s1614_s10 = int_to_ptr.vmem [resolvable:$true] %s961_s10 }
  0x34   : > { %1161 = vmatprep.subr.bf16.mxu0 %v1393_v13  ;;  %1167 = vmatprep.subr.bf16.mxu1 %v1393_v13  ;;  %s1297_s21 = scalar_lea.vmem %s1614_s10, 128  ;;  %p1304_p4 = scmp.lt.s32.totalorder %s1614_s10, %s1302_s25 }
  0x35   : > { %p1298_p1 = scmp.ne.s32.totalorder %s1614_s10, %s1297_s21  ;;  %p1305_p5 = scmp.lt.s32.totalorder %s1303_s9, %s1297_s21 }
  0x37   : > { %p1299_p2 = pnand %p1298_p1, %p1476_p8  ;;  %p1306_p6 = por %p1305_p5, %p1304_p4 }
  0x39   : > { %1152 = vmatmul.mubr.msk.bf16.vlgmr.msra.gmra.mrb[4].mxu0 %vm283_vm1, %v378_v23  ;;  %1158 = vmatmul.mubr.msk.bf16.vlgmr.msra.gmra.mrb[4].mxu1 %vm283_vm1, %v434_v24  ;;  %p1300_p3 = pneg %p1299_p2 }
  0x3a   : > { %1162 = vmatpush3.bf16.msra.mxu0 %v1289_v25  ;;  %1168 = vmatpush3.bf16.msra.mxu1 %v1290_v26 }
  0x3b   : > { %1163 = vmatprep.mubr.msk.bf16.mxu0 %vm1394_vm0, %v1393_v13  ;;  %1169 = vmatprep.mubr.msk.bf16.mxu1 %vm1394_vm0, %v1393_v13  ;;  %p1307_p7 = pnand %p1306_p6, %p1300_p3 }
  0x3c   : > { %1173 = vmatprep.subr.bf16.mxu0 %v1393_v13  ;;  %1179 = vmatprep.subr.bf16.mxu1 %v1393_v13 }
  0x41   : > { %1164 = vmatmul.mubr.msk.bf16.vlgmr.msra.gmra.mrb[8].mxu0 %vm283_vm1, %v490_v29  ;;  %1170 = vmatmul.mubr.msk.bf16.vlgmr.msra.gmra.mrb[8].mxu1 %vm283_vm1, %v546_v30 }
  0x42   : > { %1174 = vmatpush3.bf16.msra.mxu0 %v1291_v31  ;;  %1180 = vmatpush3.bf16.msra.mxu1 %v1292_v32 }
  0x43   : > { %1175 = vmatprep.mubr.msk.bf16.mxu0 %vm1394_vm0, %v1393_v13  ;;  %1181 = vmatprep.mubr.msk.bf16.mxu1 %vm1394_vm0, %v1393_v13 }
  0x44   : > { %1185 = vmatprep.subr.bf16.mxu0 %v1393_v13  ;;  %1191 = vmatprep.subr.bf16.mxu1 %v1393_v13 }
  0x49   : > { %1176 = vmatmul.mubr.msk.bf16.vlgmr.msra.gmra.mrb[12].mxu0 %vm283_vm1, %v602_v35  ;;  %1182 = vmatmul.mubr.msk.bf16.vlgmr.msra.gmra.mrb[12].mxu1 %vm283_vm1, %v658_v36 }
  0x4a   : > { %1186 = vmatpush3.bf16.msra.mxu0 %v1293_v37  ;;  %1192 = vmatpush3.bf16.msra.mxu1 %v1294_v38 }
  0x4b   : > { %1187 = vmatprep.mubr.msk.bf16.mxu0 %vm1394_vm0, %v1393_v13  ;;  %1193 = vmatprep.mubr.msk.bf16.mxu1 %vm1394_vm0, %v1393_v13 }
  0x4c   : > { %1197 = vmatprep.subr.bf16.mxu0 %v1393_v13  ;;  %1203 = vmatprep.subr.bf16.mxu1 %v1393_v13 }
  0x51   : > { %1188 = vmatmul.mubr.msk.bf16.vlgmr.msra.gmra.mrb[16].mxu0 %vm283_vm1, %v714_v41  ;;  %1194 = vmatmul.mubr.msk.bf16.vlgmr.msra.gmra.mrb[16].mxu1 %vm283_vm1, %v770_v42 }
  0x52   : > { %1198 = vmatpush3.bf16.msra.mxu0 %v1295_v43  ;;  %1204 = vmatpush3.bf16.msra.mxu1 %v1296_v44 }
  0x53   : > { %1199 = vmatprep.mubr.msk.bf16.mxu0 %vm1394_vm0, %v1393_v13  ;;  %1205 = vmatprep.mubr.msk.bf16.mxu1 %vm1394_vm0, %v1393_v13 }
  0x59   : > { %1200 = vmatmul.mubr.msk.bf16.vlgmr.msra.gmra.mrb[20].mxu0 %vm283_vm1, %v826_v47  ;;  %1206 = vmatmul.mubr.msk.bf16.vlgmr.msra.gmra.mrb[20].mxu1 %vm283_vm1, %v882_v48 }
 0x104   : > { %v321_v49 = vpop.f32.mrb[0].mxu0  ;;  %v370_v50 = vpop.f32.mrb[0].mxu1 }
 0x105   : > { %v371_v51 = vadd.f32 %v370_v50, %v321_v49  ;;  %v1141_v52 = vpop.f32.mrb[1].mxu0  ;;  %v1147_v53 = vpop.f32.mrb[1].mxu1 }
 0x106   : > { %v324_v54 = vpop.f32.mrb[2].mxu0  ;;  %v373_v55 = vpop.f32.mrb[2].mxu1 }
 0x107   : > { %v1142_v56 = vpop.f32.mrb[3].mxu0  ;;  %v1148_v57 = vpop.f32.mrb[3].mxu1 }
 0x10c   : > { %v425_v58 = vpop.f32.mrb[4].mxu0  ;;  %v481_v59 = vpop.f32.mrb[4].mxu1 }
 0x10d   : > { %v431_v60 = vadd.f32 %v425_v58, %v371_v51  ;;  %v1153_v61 = vpop.f32.mrb[5].mxu0  ;;  %v1159_v62 = vpop.f32.mrb[5].mxu1 }
 0x10e   : > { %v428_v63 = vpop.f32.mrb[6].mxu0  ;;  %v484_v0 = vpop.f32.mrb[6].mxu1 }
 0x10f   : > { %v487_v1 = vadd.f32 %v481_v59, %v431_v60  ;;  %v1154_v2 = vpop.f32.mrb[7].mxu0  ;;  %v1160_v3 = vpop.f32.mrb[7].mxu1 }
 0x114   : > { %v537_v4 = vpop.f32.mrb[8].mxu0  ;;  %v593_v5 = vpop.f32.mrb[8].mxu1 }
 0x115   : > { %v543_v6 = vadd.f32 %v537_v4, %v487_v1  ;;  %v1165_v7 = vpop.f32.mrb[9].mxu0  ;;  %v1171_v8 = vpop.f32.mrb[9].mxu1 }
 0x116   : > { %v540_v9 = vpop.f32.mrb[10].mxu0  ;;  %v596_v10 = vpop.f32.mrb[10].mxu1 }
 0x117   : > { %v599_v11 = vadd.f32 %v593_v5, %v543_v6  ;;  %v1166_v12 = vpop.f32.mrb[11].mxu0  ;;  %v1172_v13 = vpop.f32.mrb[11].mxu1 }
 0x11c   : > { %v649_v14 = vpop.f32.mrb[12].mxu0  ;;  %v705_v15 = vpop.f32.mrb[12].mxu1 }
 0x11d   : > { %v655_v16 = vadd.f32 %v649_v14, %v599_v11  ;;  %v1177_v17 = vpop.f32.mrb[13].mxu0  ;;  %v1183_v18 = vpop.f32.mrb[13].mxu1 }
 0x11e   : > { %v652_v19 = vpop.f32.mrb[14].mxu0  ;;  %v708_v20 = vpop.f32.mrb[14].mxu1 }
 0x11f   : > { %v711_v21 = vadd.f32 %v705_v15, %v655_v16  ;;  %v1178_v22 = vpop.f32.mrb[15].mxu0  ;;  %v1184_v23 = vpop.f32.mrb[15].mxu1 }
 0x124   : > { %v761_v24 = vpop.f32.mrb[16].mxu0  ;;  %v817_v25 = vpop.f32.mrb[16].mxu1 }
 0x125   : > { %v767_v26 = vadd.f32 %v761_v24, %v711_v21  ;;  %v1189_v27 = vpop.f32.mrb[17].mxu0  ;;  %v1195_v28 = vpop.f32.mrb[17].mxu1 }
 0x126   : > { %v764_v29 = vpop.f32.mrb[18].mxu0  ;;  %v820_v30 = vpop.f32.mrb[18].mxu1 }
 0x127   : > { %v823_v31 = vadd.f32 %v817_v25, %v767_v26  ;;  %v1190_v32 = vpop.f32.mrb[19].mxu0  ;;  %v1196_v33 = vpop.f32.mrb[19].mxu1 }
 0x12c   : > { %v873_v34 = vpop.f32.mrb[20].mxu0  ;;  %v929_v35 = vpop.f32.mrb[20].mxu1 }
 0x12d   : > { %v879_v36 = vadd.f32 %v873_v34, %v823_v31  ;;  %v1201_v37 = vpop.f32.mrb[21].mxu0  ;;  %v1207_v38 = vpop.f32.mrb[21].mxu1 }
 0x12e   : > { %v876_v40 = vpop.f32.mrb[22].mxu0  ;;  %v932_v41 = vpop.f32.mrb[22].mxu1 }
 0x12f   : > { %v935_v42 = vadd.f32 %v929_v35, %v879_v36  ;;  %v1202_v43 = vpop.f32.mrb[23].mxu0  ;;  %v1208_v44 = vpop.f32.mrb[23].mxu1 }
 0x131   : > { %v943_v45 = vadd.f32 %v1107_v39, %v935_v42 }
 0x133   : > { %944 = vst [vmem:[%s265_s8] sm:$0xff] %v943_v45 }
 0x134   : > { %1310 = shalt.err (!%p1307_p7)
}
 0x135   : > { %s1311_s5 = scalar_lea.hbm %s1612_s11, 128  ;;  %s1315_s30 = scalar_lea.hbm %s1669_s3, 2048 }
 0x136   : > { %p1312_p10 = scmp.ne.s32.totalorder %s1612_s11, %s1311_s5  ;;  %p1316_p13 = scmp.lt.u32.totalorder %s1612_s11, %s1669_s3 }
 0x137   : > { %p1317_p0 = scmp.lt.u32.totalorder %s1315_s30, %s1311_s5  ;;  %p1319_p2 = scmp.lt.u32.totalorder %s1311_s5, %s1612_s11 }
 0x138   : > { %p1313_p11 = pnand %p1312_p10, %p1476_p8 }
 0x139   : > { %p1318_p1 = por %p1317_p0, %p1316_p13 }
 0x13a   : > { %p1314_p12 = pneg %p1313_p11 }
 0x13b   : > { %p1320_p3 = por %p1319_p2, %p1318_p1 }
 0x13d   : > { %p1321_p4 = pnand %p1320_p3, %p1314_p12 }
 0x13f   : > { %1324 = shalt.err (!%p1321_p4)
}
 0x140   : > { %1212 = dma.vmem_to_hbm [thread:$0]  (%p1476_p8), %s1614_s10, 128, %s1612_s11, %s946_s20  }
 0x141 PF: > { %p1218_p5 = scmp.ge.s32.totalorder %s1391_s19, 2  ;;  %s973_s8 = sand.u32 1, %s1363_s12  }
 0x142   : > { %s974_s15 = scalar_lea.sflag [#allocation4], %s973_s8 }
 0x143   : > { %p1215_p6 = pnand %p1218_p5, %p1480_p9 }
 0x145   : > { %1358 = dma.done.wait (!%p1215_p6), %s974_s15, 128  }
 0x146   : > { %1360 = vsyncadd (!%p1215_p6), %s974_s15, 4294967168  ;;  %s16_s19 = sadd.s32 1, %s1391_s19   ;;  %s1673_s12 = smov %s1367_s13 }
 0x147   : > { %p13_p7 = scmp.ge.s32.totalorder %s16_s19, 18   ;;  %s1674_s13 = smov %s1371_s14 }
 0x148   : > { %s1675_s14 = smov %s1488_s4  ;;  %s1676_s15 = smov %s1383_s17 }
 0x149   : > { %s1677_s16 = smov %s1387_s18  ;;  %s1678_s17 = smov %s1681_s22 }
 0x14a   : > { %s1679_s18 = smov %s1685_s23  ;;  %15 = sbr.rel (!%p13_p7) target bundleno = 5 (0x5), region = 132 }
 0x151   :  { %979 = vsyncpa [#allocation4], 1 }
 0x152   :  { %981 = vsyncpa [#allocation4 + $0x1], 1 }

</bundles_post_ra>
